<compile_context>
chip_gen: v5e
topology: v5e:2x2
jax: 0.10.0
libtpu: 0.0.40
codegen_flags: <defaults>
</compile_context>

<pallas_src>
import functools

import jax
import jax.numpy as jnp
import numpy as np
from jax import lax
from jax.experimental import pallas as pl
from jax.experimental.pallas import tpu as pltpu


# ----------------------------------------------------------------------------
# Generic tiled Linear kernel:  Y = act(X @ W_t + b),  W_t pre-transposed (K, N)
# ----------------------------------------------------------------------------
def _linear_kernel(x_ref, w_ref, b_ref, o_ref, acc_ref, *, relu):
    k = pl.program_id(2)

    @pl.when(k == 0)
    def _init():
        acc_ref[...] = jnp.zeros_like(acc_ref)

    acc_ref[...] += jnp.dot(
        x_ref[...].astype(jnp.float32),
        w_ref[...].astype(jnp.float32),
        preferred_element_type=jnp.float32,
    )

    @pl.when(k == pl.num_programs(2) - 1)
    def _final():
        y = acc_ref[...] + b_ref[...].astype(jnp.float32)
        if relu:
            y = jnp.maximum(y, 0.0)
        o_ref[...] = y.astype(o_ref.dtype)


def _pick_tile(dim, pref, align):
    """Largest tile <= pref that is a multiple of `align` and divides `dim`;
    falls back to the full dimension (always a legal block shape)."""
    t = min(pref, dim)
    t = (t // align) * align
    while t >= align:
        if dim % t == 0:
            return t
        t -= align
    return dim


def pallas_linear(x, w_t, b, *, relu=False, tm=256, tn=256, tk=256):
    """x: (M, K), w_t: (K, N) pre-transposed, b: (1, N) -> (M, N)."""
    M, K = x.shape
    _, N = w_t.shape
    tm = _pick_tile(M, tm, 8)
    tn = _pick_tile(N, tn, 128)
    tk = _pick_tile(K, tk, 128)
    grid = (M // tm, N // tn, K // tk)
    return pl.pallas_call(
        functools.partial(_linear_kernel, relu=relu),
        out_shape=jax.ShapeDtypeStruct((M, N), jnp.float32),
        grid=grid,
        in_specs=[
            pl.BlockSpec((tm, tk), lambda i, j, k: (i, k)),
            pl.BlockSpec((tk, tn), lambda i, j, k: (k, j)),
            pl.BlockSpec((1, tn), lambda i, j, k: (0, j)),
        ],
        out_specs=pl.BlockSpec((tm, tn), lambda i, j, k: (i, j)),
        scratch_shapes=[pltpu.VMEM((tm, tn), jnp.float32)],
        compiler_params=pltpu.CompilerParams(
            dimension_semantics=("parallel", "parallel", "arbitrary")
        ),
    )(x, w_t, b)


# ----------------------------------------------------------------------------
# Non-recurrent path: self.lin == ReLU(Linear(x_dim -> hidden))
# ----------------------------------------------------------------------------
def dist_rnn_forward(X, params):
    """X: (B, x_dim) -> (B, hidden)."""
    return pallas_linear(X, params["w1_t"], params["b1"], relu=True)


# ----------------------------------------------------------------------------
# Recurrent path: Sigmoid(Linear(GRU(X)[1]))
#   Pre-hoisted input projection xp = X @ W_ih_t + b_ih of shape (T, B, 3H);
#   the sequential kernel only does h @ W_hh_t (one fused (H,3H) dot per step)
#   and the elementwise gate math.  Gate order along the 3H axis is [r | z | n].
# ----------------------------------------------------------------------------
def _make_gru_kernel(H, C):
    def kernel(xp_ref, whh_ref, bhh_ref, wout_ref, bout_ref, o_ref, h_ref):
        c = pl.program_id(1)

        @pl.when(c == 0)
        def _init():
            h_ref[...] = jnp.zeros_like(h_ref)

        whh = whh_ref[...]      # (H, 3H), pre-transposed, loaded once per grid step
        bhh = bhh_ref[...]      # (1, 3H)

        def step(i, h):
            xg = xp_ref[i].astype(jnp.float32)                    # (bb, 3H), has b_ih
            hg = jnp.dot(h, whh, preferred_element_type=jnp.float32) + bhh
            r = jax.nn.sigmoid(xg[:, 0:H] + hg[:, 0:H])
            z = jax.nn.sigmoid(xg[:, H:2 * H] + hg[:, H:2 * H])
            n = jnp.tanh(xg[:, 2 * H:3 * H] + r * hg[:, 2 * H:3 * H])
            return (1.0 - z) * n + z * h

        h = lax.fori_loop(0, C, step, h_ref[...], unroll=True)
        h_ref[...] = h

        @pl.when(c == pl.num_programs(1) - 1)
        def _final():
            # Linear(hidden -> 1): elementwise mul + lane reduction (no N=1 MXU dot).
            y = jnp.sum(h * wout_ref[...], axis=-1, keepdims=True) + bout_ref[...]
            o_ref[0] = jax.nn.sigmoid(y).astype(o_ref.dtype)

    return kernel


def _pick_time_chunk(T, pref=8):
    c = min(T, pref)
    while T % c != 0:
        c -= 1
    return c


def dist_rnn_forward_recurrent(X, params, *, time_chunk=None):
    """X: (T, B, hidden) -> (1, B, 1)."""
    wih_t, whh_t = params["wih_t"], params["whh_t"]     # (H, 3H) each
    bih, bhh = params["bih"], params["bhh"]             # (1, 3H) each
    wout, bout = params["w2"], params["b2"]             # (1, H), (1, 1)
    T, B, Hin = X.shape
    H = whh_t.shape[0]

    # --- hoisted input projection: one big matmul over all T*B rows ---
    xp = pallas_linear(X.reshape(T * B, Hin), wih_t, bih, relu=False)
    xp = xp.reshape(T, B, 3 * H)

    # --- chunked sequential recurrence ---
    C = time_chunk if time_chunk is not None else _pick_time_chunk(T)
    assert T % C == 0
    # split batch across the two v7x TensorCores when it is large enough
    bb = B // 2 if (B % 16 == 0) else B
    grid = (B // bb, T // C)

    return pl.pallas_call(
        _make_gru_kernel(H, C),
        out_shape=jax.ShapeDtypeStruct((1, B, 1), jnp.float32),
        grid=grid,
        in_specs=[
            pl.BlockSpec((C, bb, 3 * H), lambda b, c: (c, b, 0)),   # xp time chunk
            pl.BlockSpec((H, 3 * H), lambda b, c: (0, 0)),          # W_hh (pre-T, fused)
            pl.BlockSpec((1, 3 * H), lambda b, c: (0, 0)),          # b_hh (fused)
            pl.BlockSpec((1, H), lambda b, c: (0, 0)),              # out Linear W
            pl.BlockSpec((1, 1), lambda b, c: (0, 0)),              # out Linear b
        ],
        out_specs=pl.BlockSpec((1, bb, 1), lambda b, c: (0, b, 0)),
        scratch_shapes=[pltpu.VMEM((bb, H), jnp.float32)],          # hidden state carry
        compiler_params=pltpu.CompilerParams(
            dimension_semantics=("parallel", "arbitrary")
        ),
    )(xp, whh_t, bhh, wout, bout)


# ----------------------------------------------------------------------------
# Deterministic parameter init (PyTorch-style uniform(-1/sqrt(fan), 1/sqrt(fan)))
# Weights are stored pre-transposed (in, out); GRU gates concatenated as [r|z|n].
# ----------------------------------------------------------------------------
def init_params(key, x_dim, hidden):
    ks = jax.random.split(key, 8)
    k_lin = 1.0 / np.sqrt(x_dim)
    k_gru = 1.0 / np.sqrt(hidden)
    k_out = 1.0 / np.sqrt(hidden)
    u = lambda k, shape, s: jax.random.uniform(k, shape, jnp.float32, -s, s)
    return {
        # self.lin = Linear(x_dim, hidden) + ReLU
        "w1_t": u(ks[0], (x_dim, hidden), k_lin),
        "b1": u(ks[1], (1, hidden), k_lin),
        # self.rnn = GRU(hidden, hidden); columns stacked as [r | z | n]
        "wih_t": u(ks[2], (hidden, 3 * hidden), k_gru),
        "whh_t": u(ks[3], (hidden, 3 * hidden), k_gru),
        "bih": u(ks[4], (1, 3 * hidden), k_gru),
        "bhh": u(ks[5], (1, 3 * hidden), k_gru),
        # self.out = Linear(hidden, 1) + Sigmoid
        "w2": u(ks[6], (1, hidden), k_out),
        "b2": u(ks[7], (1, 1), k_out),
    }


# ----------------------------------------------------------------------------
# Pure-JAX reference (mirrors PyTorch GRU semantics) for validation
# ----------------------------------------------------------------------------
def ref_forward(X, p):
    return jnp.maximum(X @ p["w1_t"] + p["b1"], 0.0)


def ref_forward_recurrent(X, p):
    T, B, H = X.shape
    h = jnp.zeros((B, H), jnp.float32)
    for t in range(T):
        xg = X[t] @ p["wih_t"] + p["bih"]
        hg = h @ p["whh_t"] + p["bhh"]
        r = jax.nn.sigmoid(xg[:, :H] + hg[:, :H])
        z = jax.nn.sigmoid(xg[:, H:2 * H] + hg[:, H:2 * H])
        n = jnp.tanh(xg[:, 2 * H:] + r * hg[:, 2 * H:])
        h = (1.0 - z) * n + z * h
    y = jax.nn.sigmoid(h @ p["w2"].T + p["b2"])      # (B, 1)
    return y[None, :, :]                             # (1, B, 1)


if __name__ == "__main__":
    # NOTE: at these module-default sizes (H=3, B=2, T=8) everything is vreg padding;
    # the kernels are written so the same code scales to production shapes.
    x_dim, hidden = 3, 3          # module defaults: DistRNN(x_dim=3, hidden=3)
    batch, seq = 2, 8

    key = jax.random.PRNGKey(0)
    k_x1, k_x2, k_p = jax.random.split(key, 3)
    params = init_params(k_p, x_dim, hidden)

    # Non-recurrent path input: (B, x_dim)
    X_lin = jax.random.normal(k_x1, (batch, x_dim), jnp.float32)
    # Recurrent path input: (T, B, hidden)  (GRU input size == hidden)
    X_rnn = jax.random.normal(k_x2, (seq, batch, hidden), jnp.float32)

    y_lin = jax.block_until_ready(dist_rnn_forward(X_lin, params))
    y_rnn = jax.block_until_ready(dist_rnn_forward_recurrent(X_rnn, params))

    assert y_lin.shape == (batch, hidden)
    assert y_rnn.shape == (1, batch, 1)
    np.testing.assert_allclose(np.asarray(y_lin), np.asarray(ref_forward(X_lin, params)),
                               rtol=1e-5, atol=1e-5)
    np.testing.assert_allclose(np.asarray(y_rnn),
                               np.asarray(ref_forward_recurrent(X_rnn, params)),
                               rtol=1e-5, atol=1e-5)

    print("KERNEL_OK")
</pallas_src>

<mosaic_0001>
module attributes {stable_mosaic.version = 11 : i64} {
  func.func @_linear_kernel(%arg0: i32, %arg1: i32, %arg2: i32, %arg3: memref<2x3xf32, #tpu.memory_space<vmem>>, %arg4: memref<3x3xf32, #tpu.memory_space<vmem>>, %arg5: memref<1x3xf32, #tpu.memory_space<vmem>>, %arg6: memref<2x3xf32, #tpu.memory_space<vmem>>, %arg7: memref<2x3xf32, #tpu.memory_space<vmem>>) attributes {dimension_semantics = [#tpu.dimension_semantics<parallel>, #tpu.dimension_semantics<parallel>, #tpu.dimension_semantics<arbitrary>], iteration_bounds = array<i64: 1, 1, 1>, scalar_prefetch = 0 : i64, scratch_operands = 1 : i64, tpu.core_type = #tpu.core_type<tc>, window_params = [{transform_indices = @transform_0, window_bounds = array<i64: 2, 3>}, {transform_indices = @transform_1, window_bounds = array<i64: 3, 3>}, {transform_indices = @transform_2, window_bounds = array<i64: 1, 3>}, {transform_indices = @transform_3, window_bounds = array<i64: 2, 3>}]} {
    %c0_i32 = arith.constant 0 : i32
    %0 = arith.cmpi eq, %arg2, %c0_i32 : i32
    %1 = arith.extui %0 : i1 to i32
    %c0_i32_0 = arith.constant 0 : i32
    %2 = arith.cmpi ne, %1, %c0_i32_0 : i32
    scf.if %2 {
      %cst_10 = arith.constant 0.000000e+00 : f32
      %12 = vector.broadcast %cst_10 : f32 to vector<2x3xf32>
      %c0_11 = arith.constant 0 : index
      %c0_12 = arith.constant 0 : index
      %13 = vector.load %arg7[%c0_11, %c0_12] : memref<2x3xf32, #tpu.memory_space<vmem>>, vector<2x3xf32>
      tpu.vector_store %arg7[%c0_11, %c0_12], %12 {strides = array<i32>} : memref<2x3xf32, #tpu.memory_space<vmem>>, vector<2x3xf32>,
    } else {
    }
    %c0 = arith.constant 0 : index
    %c0_1 = arith.constant 0 : index
    %3 = vector.load %arg7[%c0, %c0_1] : memref<2x3xf32, #tpu.memory_space<vmem>>, vector<2x3xf32>
    %c0_2 = arith.constant 0 : index
    %c0_3 = arith.constant 0 : index
    %4 = vector.load %arg3[%c0_2, %c0_3] : memref<2x3xf32, #tpu.memory_space<vmem>>, vector<2x3xf32>
    %c0_4 = arith.constant 0 : index
    %c0_5 = arith.constant 0 : index
    %5 = vector.load %arg4[%c0_4, %c0_5] : memref<3x3xf32, #tpu.memory_space<vmem>>, vector<3x3xf32>
    %cst = arith.constant dense<0.000000e+00> : vector<2x3xf32>
    %6 = tpu.matmul %4, %5, %cst {dimension_numbers = #tpu.dot_dimension_numbers<[1], [0], [0], [1], [0, 0, 1, 1], [], []>} : vector<2x3xf32>, vector<3x3xf32>, vector<2x3xf32> -> vector<2x3xf32>
    %7 = arith.addf %3, %6 : vector<2x3xf32>
    %c0_6 = arith.constant 0 : index
    %c0_7 = arith.constant 0 : index
    %8 = vector.load %arg7[%c0_6, %c0_7] : memref<2x3xf32, #tpu.memory_space<vmem>>, vector<2x3xf32>
    tpu.vector_store %arg7[%c0_6, %c0_7], %7 {strides = array<i32>} : memref<2x3xf32, #tpu.memory_space<vmem>>, vector<2x3xf32>,
    %c0_i32_8 = arith.constant 0 : i32
    %9 = arith.cmpi eq, %arg2, %c0_i32_8 : i32
    %10 = arith.extui %9 : i1 to i32
    %c0_i32_9 = arith.constant 0 : i32
    %11 = arith.cmpi ne, %10, %c0_i32_9 : i32
    scf.if %11 {
      %c0_10 = arith.constant 0 : index
      %c0_11 = arith.constant 0 : index
      %12 = vector.load %arg7[%c0_10, %c0_11] : memref<2x3xf32, #tpu.memory_space<vmem>>, vector<2x3xf32>
      %c0_12 = arith.constant 0 : index
      %c0_13 = arith.constant 0 : index
      %13 = vector.load %arg5[%c0_12, %c0_13] : memref<1x3xf32, #tpu.memory_space<vmem>>, vector<1x3xf32>
      %14 = vector.broadcast %13 : vector<1x3xf32> to vector<2x3xf32>
      %15 = arith.addf %12, %14 : vector<2x3xf32>
      %cst_14 = arith.constant 0.000000e+00 : f32
      %16 = vector.broadcast %cst_14 : f32 to vector<2x3xf32>
      %17 = arith.maximumf %15, %16 : vector<2x3xf32>
      %c0_15 = arith.constant 0 : index
      %c0_16 = arith.constant 0 : index
      %18 = vector.load %arg6[%c0_15, %c0_16] : memref<2x3xf32, #tpu.memory_space<vmem>>, vector<2x3xf32>
      tpu.vector_store %arg6[%c0_15, %c0_16], %17 {strides = array<i32>} : memref<2x3xf32, #tpu.memory_space<vmem>>, vector<2x3xf32>,
    } else {
    }
    return
  }
  func.func @transform_0(%arg0: i32, %arg1: i32, %arg2: i32) -> (i32, i32) {
    %c0_i32 = arith.constant 0 : i32
    return %arg0, %arg2 : i32, i32
  }
  func.func @transform_1(%arg0: i32, %arg1: i32, %arg2: i32) -> (i32, i32) {
    %c0_i32 = arith.constant 0 : i32
    return %arg2, %arg1 : i32, i32
  }
  func.func @transform_2(%arg0: i32, %arg1: i32, %arg2: i32) -> (i32, i32) {
    %c0_i32 = arith.constant 0 : i32
    %c0_i32_0 = arith.constant 0 : i32
    return %c0_i32, %arg1 : i32, i32
  }
  func.func @transform_3(%arg0: i32, %arg1: i32, %arg2: i32) -> (i32, i32) {
    %c0_i32 = arith.constant 0 : i32
    return %arg0, %arg1 : i32, i32
  }
}

</mosaic_0001>

<bundles_post_ra>
// kernel: tpu_custom_call.1
= control target key start
LH: loop header
LB: loop body
LE: loop exit
PB: predicated region body
PF: predicated region fallthrough
CT: control target
= control target key end

     0   :  { %8 = vsyncpa [#allocation4], 0  ;;  %s236_s0 = inlined_call_operand.hbm [shape: f32[2,3], index: 0, kind: input, shape index: {}]   ;;  %s237_s1 = inlined_call_operand.hbm [shape: f32[3,3], index: 1, kind: input, shape index: {}]   ;;  %s238_s2 = inlined_call_operand.vmem [shape: f32[1,3], index: 2, kind: input, shape index: {}]   ;;  %s239_s3 = inlined_call_operand.hbm [shape: f32[2,3], index: 3, kind: output, shape index: {}]  }
   0x1   :  { %9 = vsyncpa [#allocation7], 0 }
   0x2   :  { %10 = vsyncpa [#allocation5], 0  ;;  %s16_s14 = sshll.u32 %s236_s0, 4  ;;  %s197_s15 = smov [#allocation3]   ;;  %s17_s14 = int_to_ptr.hbm [resolvable:$true] %s16_s14 }
   0x3   :  { %s18_s16 = sshll.u32 %s197_s15, 4  ;;  %s27_s19 = sshll.u32 %s237_s1, 4  ;;  %s19_s16 = int_to_ptr.vmem [resolvable:$true] %s18_s16  ;;  %s28_s19 = int_to_ptr.hbm [resolvable:$true] %s27_s19 }
   0x4   :  { %21 = dma.hbm_to_vmem [thread:$0]  %s17_s14, 32, %s19_s16, [#allocation4]  }
   0x5   :  { %s198_s20 = smov [#allocation6]  }
   0x6   :  { %s29_s21 = sshll.u32 %s198_s20, 4  ;;  %s30_s21 = int_to_ptr.vmem [resolvable:$true] %s29_s21 }
   0x7   :  { %32 = dma.hbm_to_vmem [thread:$0]  %s28_s19, 64, %s30_s21, [#allocation7]  }
   0x8   :  { %191 = dma.done.wait [#allocation4], 32  }
   0x9   :  { %192 = vsyncadd [#allocation4], 4294967264 }
   0xa   :  { %193 = dma.done.wait [#allocation7], 64  }
   0xb   :  { %194 = vsyncadd [#allocation7], 4294967232  ;;  %vm47_vm0 = vcmask 17408   ;;  %v199_v0 = vmov 0.0   ;;  %vm56_vm1 = vcmask 1042432   ;;  %vm52_vm2 = vcmask 23552  }
   0xc   :  { %48 = vst.msk [vmem:[#allocation2] sm:$0x3] %vm47_vm0, %v199_v0  ;;  %v51_v1 = vld [vmem:[#allocation6] sm:$0x7]  ;;  %v50_v2 = vld [vmem:[#allocation3] sm:$0x3] }
   0xd   :  { %112 = vmatpush.msk.msra.mxu0 %vm56_vm1, %v51_v1  ;;  %v118_v6 = vld [vmem:[%s238_s2] ss:$0 sm:$0xff]  ;;  %s200_s22 = smov [#allocation8]   ;;  %s101_s26 = sshll.u32 %s239_s3, 4  ;;  %s102_s26 = int_to_ptr.hbm [resolvable:$true] %s101_s26 }
   0xe   :  { %113 = vmatmul.msk.f32.vlgmr.msra.gmra.mxu0 %vm52_vm2, %v50_v2  ;;  %s99_s23 = sshll.u32 %s200_s22, 4  ;;  %s100_s23 = int_to_ptr.vmem [resolvable:$true] %s99_s23 }
  0x13   :  { %v49_v3 = vld [vmem:[#allocation2] sm:$0x3] }
  0x8b   :  { %v77_v4 = vpop.f32.mrf.mxu0 }
  0x8c   :  { %v80_v5 = vadd.f32 %v77_v4, %v49_v3 }
  0x8e   :  { %82 = vst.msk [vmem:[#allocation2] sm:$0x3] %vm47_vm0, %v80_v5 }
  0x95   :  { %v86_v7 = vld [vmem:[#allocation2] sm:$0x3] }
  0x96   :  { %v91_v8 = vadd.f32 %v118_v6, %v86_v7 }
  0x98   :  { %v92_v9 = vmax.f32 %v91_v8, 0.0 }
  0x9a   :  { %93 = vst.msk [vmem:[#allocation8] sm:$0x3] %vm47_vm0, %v92_v9 }
  0x9b   :  { %104 = dma.vmem_to_hbm [thread:$0]  %s100_s23, 32, %s102_s26, [#allocation5]  }
  0x9c   :  { %195 = dma.done.wait [#allocation5], 32  }
  0x9d   :  { %196 = vsyncadd [#allocation5], 4294967264 }
  0x9e   :  { %109 = vsyncpa [#allocation4], 1 }
  0x9f   :  { %110 = vsyncpa [#allocation7], 1 }
  0xa0   :  { %111 = vsyncpa [#allocation5], 1 }

</bundles_post_ra>
